<compile_context>
chip_gen: v7x
topology: tpu7x:2x2x1
jax: 0.10.0
libtpu: 0.0.40
codegen_flags: <defaults>
</compile_context>

<pallas_src>
import functools

import jax
import jax.numpy as jnp
from jax import lax
from jax.experimental import pallas as pl
from jax.experimental.pallas import tpu as pltpu


def _round_up(x, m):
    return ((x + m - 1) // m) * m


def _pad2d(a, rows, cols):
    r, c = a.shape
    if (r, c) == (rows, cols):
        return a
    return jnp.pad(a, ((0, rows - r), (0, cols - c)))


# ----------------------------------------------------------------------------
# Fused Pallas kernel: encoder linear -> decoder linear -> MMD regulariser
# ----------------------------------------------------------------------------
def _fused_vae_kernel(x_ref, enc_w_ref, enc_b_ref, dec_w_ref, dec_b_ref,
                      ts_ref, latent_ref, recon_ref, mmd_ref,
                      *, valid_b, mmd_dim, compute_dtype):
    # ---- encoder: latent = x @ enc_w + enc_b (bf16 MXU, f32 accumulate) -----
    x = x_ref[...].astype(compute_dtype)                       # (Bp, SDp)
    enc_w = enc_w_ref[...].astype(compute_dtype)                # (SDp, Lp)
    latent = jnp.dot(x, enc_w, preferred_element_type=jnp.float32)
    latent = latent + enc_b_ref[...].astype(jnp.float32)        # bias in epilogue
    latent_ref[...] = latent.astype(latent_ref.dtype)           # lane-dense store

    # ---- decoder: recon = latent @ dec_w + dec_b (latent stays on-chip) -----
    dec_w = dec_w_ref[...].astype(compute_dtype)                # (Lp, SDp)
    recon = jnp.dot(latent.astype(compute_dtype), dec_w,
                    preferred_element_type=jnp.float32)
    recon_ref[...] = (recon + dec_b_ref[...].astype(jnp.float32)
                      ).astype(recon_ref.dtype)

    # ---- MMD(true_samples, latent) via a single Gram matmul -----------------
    # k(a_i, b_j) = exp(-||a_i - b_j||^2 / dim^2);  padded lanes are zero in
    # both operands so they contribute nothing to distances; dim is the TRUE L.
    ts = ts_ref[...].astype(jnp.float32)                        # (B,  Lp)
    la = latent[:valid_b]                                       # (B,  Lp) f32
    C = jnp.concatenate([ts, la], axis=0)                       # (2B, Lp)
    sq = jnp.sum(C * C, axis=-1, keepdims=True)                 # (2B, 1)
    G = lax.dot_general(C, C, (((1,), (1,)), ((), ())),         # (2B, 2B)
                        preferred_element_type=jnp.float32)
    neg_inv_dim2 = -1.0 / float(mmd_dim * mmd_dim)
    d2 = jnp.maximum(sq + sq.T - 2.0 * G, 0.0)                  # clamp cancellation
    K = jnp.exp(d2 * neg_inv_dim2)                              # one shared exp tile
    b = valid_b
    mmd = (jnp.mean(K[:b, :b])        # k(t, t)
           + jnp.mean(K[b:, b:])      # k(l, l)
           - 2.0 * jnp.mean(K[:b, b:]))                         # k(t, l)
    mmd_ref[...] = jnp.reshape(mmd, (1, 1)).astype(mmd_ref.dtype)


def _vmem_spec():
    # Whole-array VMEM residency; no grid, no index_map (tiny shapes).
    return pl.BlockSpec(memory_space=pltpu.MemorySpace.VMEM)


# ----------------------------------------------------------------------------
# EncoderDecoderVAE forward (default / eval path) — single fused pallas_call
# ----------------------------------------------------------------------------
def encoder_decoder_vae_forward(input_encoding, params, true_samples,
                                *, compute_dtype=jnp.bfloat16):
    """Returns (latent, reconstructed_encoding, reg_loss, latent_dropout)."""
    B, S, D = input_encoding.shape
    SD = S * D
    L = params["enc_w"].shape[1]

    # Padded, lane-/sublane-aligned shapes (unmasked loads/stores, MXU-shaped).
    Bp = _round_up(B, 8)
    Lp = _round_up(L, 128)
    SDp = _round_up(SD, 128)

    weight_dtype = compute_dtype  # bf16 default: halves weight HBM->VMEM bytes

    x2d = _pad2d(input_encoding.reshape(B, SD).astype(jnp.float32), Bp, SDp)
    enc_w = _pad2d(params["enc_w"], SDp, Lp).astype(weight_dtype)
    enc_b = _pad2d(params["enc_b"].reshape(1, L).astype(jnp.float32), 1, Lp)
    dec_w = _pad2d(params["dec_w"], Lp, SDp).astype(weight_dtype)
    dec_b = _pad2d(params["dec_b"].reshape(1, SD).astype(jnp.float32), 1, SDp)
    ts = _pad2d(true_samples.astype(jnp.float32), B, Lp)

    kernel = functools.partial(_fused_vae_kernel, valid_b=B, mmd_dim=L,
                               compute_dtype=compute_dtype)

    # ---- VMEM budget: derive from the queried capacity (64 MiB/TC on v7x) ---
    operands = (x2d, enc_w, enc_b, dec_w, dec_b, ts)
    out_bytes = (Bp * Lp + Bp * SDp + 1) * 4
    footprint = sum(int(a.size) * a.dtype.itemsize for a in operands) + out_bytes
    try:
        vmem_cap = int(pltpu.get_tpu_info().vmem_capacity_bytes)
    except Exception:
        vmem_cap = 64 * 1024 * 1024   # v7x per-TC floor
    vmem_limit = int(max(16 * 1024 * 1024, min(8 * footprint, vmem_cap // 2)))

    # ---- advisory cost hint for the surrounding XLA schedule -----------------
    gram_rows = 2 * B
    cost = pl.CostEstimate(
        flops=2 * Bp * SDp * Lp            # encoder matmul
              + 2 * Bp * Lp * SDp          # decoder matmul
              + 2 * gram_rows * gram_rows * Lp,   # MMD Gram
        transcendentals=gram_rows * gram_rows,    # exp tile
        bytes_accessed=footprint,
    )

    latent_p, recon_p, mmd = pl.pallas_call(
        kernel,
        out_shape=(
            jax.ShapeDtypeStruct((Bp, Lp), jnp.float32),    # latent slab
            jax.ShapeDtypeStruct((Bp, SDp), jnp.float32),   # recon slab
            jax.ShapeDtypeStruct((1, 1), jnp.float32),      # mmd scalar
        ),
        in_specs=[_vmem_spec()] * 6,
        out_specs=(_vmem_spec(), _vmem_spec(), _vmem_spec()),
        compiler_params=pltpu.CompilerParams(vmem_limit_bytes=vmem_limit),
        cost_estimate=cost,
    )(x2d, enc_w, enc_b, dec_w, dec_b, ts)

    latent = latent_p[:B, :L]
    recon = recon_p[:B, :SD].reshape(B, S, D)
    reg_loss = mmd[0, 0]
    latent_dropout = jnp.float32(0.0)  # use_latent_dropout=False / no global_step
    return latent, recon, reg_loss, latent_dropout


# ----------------------------------------------------------------------------
# Pure-JAX reference (sanity check against the fused kernel)
# ----------------------------------------------------------------------------
def _ref_forward(input_encoding, params, true_samples):
    B, S, D = input_encoding.shape
    x2d = input_encoding.reshape(B, S * D)
    latent = x2d @ params["enc_w"] + params["enc_b"]
    recon = (latent @ params["dec_w"] + params["dec_b"]).reshape(B, S, D)

    def kmat(a, b):
        diff = a[:, None, :] - b[None, :, :]
        dim = a.shape[1]
        return jnp.exp(-jnp.mean(diff ** 2, axis=2) / dim)

    mmd = (jnp.mean(kmat(true_samples, true_samples))
           + jnp.mean(kmat(latent, latent))
           - 2.0 * jnp.mean(kmat(true_samples, latent)))
    return latent, recon, mmd


if __name__ == "__main__":
    # Small shapes consistent with the module: batch=2, seq=8, hidden=32, latent=16
    B, S, D, L = 2, 8, 32, 16

    key = jax.random.PRNGKey(0)
    k_in, k_ew, k_eb, k_dw, k_db, k_ts = jax.random.split(key, 6)

    input_encoding = jax.random.normal(k_in, (B, S, D), dtype=jnp.float32)

    params = {
        "enc_w": jax.random.normal(k_ew, (S * D, L), dtype=jnp.float32) * 0.05,
        "enc_b": jax.random.normal(k_eb, (L,), dtype=jnp.float32) * 0.01,
        "dec_w": jax.random.normal(k_dw, (L, S * D), dtype=jnp.float32) * 0.05,
        "dec_b": jax.random.normal(k_db, (S * D,), dtype=jnp.float32) * 0.01,
    }
    # deterministic stand-in for torch.randn(combined_latent.size())
    true_samples = jax.random.normal(k_ts, (B, L), dtype=jnp.float32)

    ref_latent, ref_recon, ref_mmd = _ref_forward(input_encoding, params,
                                                  true_samples)

    # 1) f32 compute path — bit-tight structural check against the reference.
    lat32, rec32, mmd32, _ = encoder_decoder_vae_forward(
        input_encoding, params, true_samples, compute_dtype=jnp.float32)
    jax.block_until_ready((lat32, rec32, mmd32))
    assert lat32.shape == (B, L) and rec32.shape == (B, S, D)
    assert jnp.allclose(lat32, ref_latent, rtol=1e-3, atol=1e-3)
    assert jnp.allclose(rec32, ref_recon, rtol=1e-3, atol=1e-3)
    assert jnp.allclose(mmd32, ref_mmd, rtol=1e-3, atol=1e-3)

    # 2) Default bf16-MXU path (production setting) — looser tolerance since
    #    the latent / recon go through bf16 MXU inputs with f32 accumulation.
    latent, recon, reg_loss, latent_dropout = encoder_decoder_vae_forward(
        input_encoding, params, true_samples)
    jax.block_until_ready((latent, recon, reg_loss, latent_dropout))
    assert latent.shape == (B, L) and recon.shape == (B, S, D)
    assert jnp.allclose(latent, ref_latent, rtol=2e-2, atol=2e-2)
    assert jnp.allclose(recon, ref_recon, rtol=2e-2, atol=2e-2)
    assert jnp.allclose(reg_loss, ref_mmd, rtol=2e-2, atol=5e-3)

    print("KERNEL_OK")
</pallas_src>

<mosaic_0001>
module attributes {stable_mosaic.version = 11 : i64} {
  func.func @_fused_vae_kernel(%arg0: memref<8x256xf32, #tpu.memory_space<vmem>>, %arg1: memref<256x128xf32, #tpu.memory_space<vmem>>, %arg2: memref<1x128xf32, #tpu.memory_space<vmem>>, %arg3: memref<128x256xf32, #tpu.memory_space<vmem>>, %arg4: memref<1x256xf32, #tpu.memory_space<vmem>>, %arg5: memref<2x128xf32, #tpu.memory_space<vmem>>, %arg6: memref<8x128xf32, #tpu.memory_space<vmem>>, %arg7: memref<8x256xf32, #tpu.memory_space<vmem>>, %arg8: memref<1x1xf32, #tpu.memory_space<vmem>>) attributes {dimension_semantics = [], scalar_prefetch = 0 : i64, scratch_operands = 0 : i64, tpu.core_type = #tpu.core_type<tc>} {
    %c0 = arith.constant 0 : index
    %c0_0 = arith.constant 0 : index
    %0 = vector.load %arg0[%c0, %c0_0] : memref<8x256xf32, #tpu.memory_space<vmem>>, vector<8x256xf32>
    %c0_1 = arith.constant 0 : index
    %c0_2 = arith.constant 0 : index
    %1 = vector.load %arg1[%c0_1, %c0_2] : memref<256x128xf32, #tpu.memory_space<vmem>>, vector<256x128xf32>
    %cst = arith.constant dense<0.000000e+00> : vector<8x128xf32>
    %2 = tpu.matmul %0, %1, %cst {dimension_numbers = #tpu.dot_dimension_numbers<[1], [0], [0], [1], [0, 0, 1, 1], [], []>} : vector<8x256xf32>, vector<256x128xf32>, vector<8x128xf32> -> vector<8x128xf32>
    %c0_3 = arith.constant 0 : index
    %c0_4 = arith.constant 0 : index
    %3 = vector.load %arg2[%c0_3, %c0_4] : memref<1x128xf32, #tpu.memory_space<vmem>>, vector<1x128xf32>
    %4 = vector.broadcast %3 : vector<1x128xf32> to vector<8x128xf32>
    %5 = arith.addf %2, %4 : vector<8x128xf32>
    %c0_5 = arith.constant 0 : index
    %c0_6 = arith.constant 0 : index
    %6 = vector.load %arg6[%c0_5, %c0_6] : memref<8x128xf32, #tpu.memory_space<vmem>>, vector<8x128xf32>
    tpu.vector_store %arg6[%c0_5, %c0_6], %5 {strides = array<i32>} : memref<8x128xf32, #tpu.memory_space<vmem>>, vector<8x128xf32>,
    %c0_7 = arith.constant 0 : index
    %c0_8 = arith.constant 0 : index
    %7 = vector.load %arg3[%c0_7, %c0_8] : memref<128x256xf32, #tpu.memory_space<vmem>>, vector<128x256xf32>
    %cst_9 = arith.constant dense<0.000000e+00> : vector<8x256xf32>
    %8 = tpu.matmul %5, %7, %cst_9 {dimension_numbers = #tpu.dot_dimension_numbers<[1], [0], [0], [1], [0, 0, 1, 1], [], []>} : vector<8x128xf32>, vector<128x256xf32>, vector<8x256xf32> -> vector<8x256xf32>
    %c0_10 = arith.constant 0 : index
    %c0_11 = arith.constant 0 : index
    %9 = vector.load %arg4[%c0_10, %c0_11] : memref<1x256xf32, #tpu.memory_space<vmem>>, vector<1x256xf32>
    %10 = vector.broadcast %9 : vector<1x256xf32> to vector<8x256xf32>
    %11 = arith.addf %8, %10 : vector<8x256xf32>
    %c0_12 = arith.constant 0 : index
    %c0_13 = arith.constant 0 : index
    %12 = vector.load %arg7[%c0_12, %c0_13] : memref<8x256xf32, #tpu.memory_space<vmem>>, vector<8x256xf32>
    tpu.vector_store %arg7[%c0_12, %c0_13], %11 {strides = array<i32>} : memref<8x256xf32, #tpu.memory_space<vmem>>, vector<8x256xf32>,
    %c0_14 = arith.constant 0 : index
    %c0_15 = arith.constant 0 : index
    %13 = vector.load %arg5[%c0_14, %c0_15] : memref<2x128xf32, #tpu.memory_space<vmem>>, vector<2x128xf32>
    %14 = vector.extract_strided_slice %5 {offsets = [0, 0], sizes = [2, 128], strides = [1, 1]} : vector<8x128xf32> to vector<2x128xf32>
    %15 = tpu.concatenate %13, %14 in 0 : vector<2x128xf32>, vector<2x128xf32> -> vector<4x128xf32>
    %16 = arith.mulf %15, %15 : vector<4x128xf32>
    %cst_16 = arith.constant dense<0.000000e+00> : vector<4xf32>
    %17 = vector.multi_reduction <add>, %16, %cst_16 [1] : vector<4x128xf32> to vector<4xf32>
    %18 = vector.shape_cast %17 : vector<4xf32> to vector<4x1xf32>
    %cst_17 = arith.constant dense<0.000000e+00> : vector<4x4xf32>
    %19 = tpu.matmul %15, %15, %cst_17 {dimension_numbers = #tpu.dot_dimension_numbers<[1], [1], [0], [0], [0, 0, 1, 0], [], []>} : vector<4x128xf32>, vector<4x128xf32>, vector<4x4xf32> -> vector<4x4xf32>
    %20 = tpu.transpose %18, [1, 0] : vector<4x1xf32> -> vector<1x4xf32>
    %21 = vector.broadcast %18 : vector<4x1xf32> to vector<4x4xf32>
    %22 = vector.broadcast %20 : vector<1x4xf32> to vector<4x4xf32>
    %23 = arith.addf %21, %22 : vector<4x4xf32>
    %cst_18 = arith.constant 2.000000e+00 : f32
    %24 = vector.broadcast %cst_18 : f32 to vector<4x4xf32>
    %25 = arith.mulf %24, %19 : vector<4x4xf32>
    %26 = arith.subf %23, %25 : vector<4x4xf32>
    %cst_19 = arith.constant 0.000000e+00 : f32
    %27 = vector.broadcast %cst_19 : f32 to vector<4x4xf32>
    %28 = arith.maximumf %26, %27 : vector<4x4xf32>
    %cst_20 = arith.constant -3.906250e-03 : f32
    %29 = vector.broadcast %cst_20 : f32 to vector<4x4xf32>
    %30 = arith.mulf %28, %29 : vector<4x4xf32>
    %31 = math.exp %30 : vector<4x4xf32>
    %32 = vector.extract_strided_slice %31 {offsets = [0, 0], sizes = [2, 2], strides = [1, 1]} : vector<4x4xf32> to vector<2x2xf32>
    %33 = vector.shape_cast %32 : vector<2x2xf32> to vector<1x2x2xf32>
    %cst_21 = arith.constant dense<0.000000e+00> : vector<1xf32>
    %34 = vector.multi_reduction <add>, %33, %cst_21 [1, 2] : vector<1x2x2xf32> to vector<1xf32>
    %35 = vector.shape_cast %34 : vector<1xf32> to vector<1x1x1xf32>
    %36 = vector.extract %35[0, 0, 0] : f32 from vector<1x1x1xf32>
    %cst_22 = arith.constant 4.000000e+00 : f32
    %37 = arith.divf %36, %cst_22 : f32
    %38 = vector.extract_strided_slice %31 {offsets = [2, 2], sizes = [2, 2], strides = [1, 1]} : vector<4x4xf32> to vector<2x2xf32>
    %39 = vector.shape_cast %38 : vector<2x2xf32> to vector<1x2x2xf32>
    %cst_23 = arith.constant dense<0.000000e+00> : vector<1xf32>
    %40 = vector.multi_reduction <add>, %39, %cst_23 [1, 2] : vector<1x2x2xf32> to vector<1xf32>
    %41 = vector.shape_cast %40 : vector<1xf32> to vector<1x1x1xf32>
    %42 = vector.extract %41[0, 0, 0] : f32 from vector<1x1x1xf32>
    %cst_24 = arith.constant 4.000000e+00 : f32
    %43 = arith.divf %42, %cst_24 : f32
    %44 = arith.addf %37, %43 : f32
    %45 = vector.extract_strided_slice %31 {offsets = [0, 2], sizes = [2, 2], strides = [1, 1]} : vector<4x4xf32> to vector<2x2xf32>
    %46 = vector.shape_cast %45 : vector<2x2xf32> to vector<1x2x2xf32>
    %cst_25 = arith.constant dense<0.000000e+00> : vector<1xf32>
    %47 = vector.multi_reduction <add>, %46, %cst_25 [1, 2] : vector<1x2x2xf32> to vector<1xf32>
    %48 = vector.shape_cast %47 : vector<1xf32> to vector<1x1x1xf32>
    %49 = vector.extract %48[0, 0, 0] : f32 from vector<1x1x1xf32>
    %cst_26 = arith.constant 4.000000e+00 : f32
    %50 = arith.divf %49, %cst_26 : f32
    %cst_27 = arith.constant 2.000000e+00 : f32
    %51 = arith.mulf %cst_27, %50 : f32
    %52 = arith.subf %44, %51 : f32
    %53 = vector.broadcast %52 : f32 to vector<1x1xf32>
    %c0_28 = arith.constant 0 : index
    %c0_29 = arith.constant 0 : index
    %54 = vector.load %arg8[%c0_28, %c0_29] : memref<1x1xf32, #tpu.memory_space<vmem>>, vector<1x1xf32>
    tpu.vector_store %arg8[%c0_28, %c0_29], %53 {strides = array<i32>} : memref<1x1xf32, #tpu.memory_space<vmem>>, vector<1x1xf32>,
    return
  }
}

</mosaic_0001>

<bundles_post_ra>
// kernel: tpu_custom_call.1
= control target key start
LH: loop header
LB: loop body
LE: loop exit
PB: predicated region body
PF: predicated region fallthrough
CT: control target
= control target key end

     0   :  { %14 = vsyncpa [#allocation3], 0  ;;  %s924_s0 = inlined_call_operand.hbm [shape: f32[8,256], index: 0, kind: input, shape index: {}]   ;;  %s925_s1 = inlined_call_operand.hbm [shape: f32[256,128], index: 1, kind: input, shape index: {}]   ;;  %s926_s2 = inlined_call_operand.vmem [shape: f32[1,128], index: 2, kind: input, shape index: {}]   ;;  %s927_s3 = inlined_call_operand.hbm [shape: f32[128,256], index: 3, kind: input, shape index: {}]   ;;  %s928_s4 = inlined_call_operand.vmem [shape: f32[1,256], index: 4, kind: input, shape index: {}]   ;;  %s929_s5 = inlined_call_operand.vmem [shape: f32[2,128], index: 5, kind: input, shape index: {}]   ;;  %s930_s6 = inlined_call_operand.hbm [shape: f32[8,128], index: 6, kind: output, shape index: {0}]   ;;  %s931_s7 = inlined_call_operand.hbm [shape: f32[8,256], index: 7, kind: output, shape index: {1}]   ;;  %s932_s8 = inlined_call_operand.hbm [shape: f32[1,1], index: 8, kind: output, shape index: {2}]  }
   0x1   :  { %15 = vsyncpa [#allocation6], 0 }
   0x2   :  { %16 = vsyncpa [#allocation4], 0 }
   0x3   :  { %17 = vsyncpa [#allocation10], 0  ;;  %s785_s27 = smov [#allocation5]   ;;  %s645_s9 = scalar_lea.hbm %s925_s1, 4096 }
   0x4   :  { %s33_s28 = sshll.u32 %s785_s27, 4  ;;  %p646_p0 = scmp.ne.s32.totalorder %s925_s1, %s645_s9  ;;  %s34_s28 = int_to_ptr.vmem [resolvable:$true] %s33_s28 }
   0x5   :  { %p649_p1 = scmp.lt.u32.totalorder %s645_s9, %s925_s1 }
   0x7   :  { %p651_p2 = pnand %p649_p1, %p646_p0 }
   0x9   :  { %654 = shalt.err (!%p651_p2)
}
   0xa   :  { %s655_s14 = scalar_lea.vmem %s34_s28, 4096  ;;  %p660_p4 = scmp.lt.s32.totalorder %s34_s28, %s34_s28 }
   0xb   :  { %p656_p3 = scmp.ne.s32.totalorder %s34_s28, %s655_s14  ;;  %p661_p5 = scmp.lt.s32.totalorder %s655_s14, %s655_s14 }
   0xd   :  { %p662_p6 = por %p661_p5, %p660_p4 }
   0xf   :  { %p663_p7 = pnand %p662_p6, %p656_p3 }
  0x11   :  { %666 = shalt.err (!%p663_p7)
}
  0x12   :  { %s786_s15 = smov 128   ;;  %s787_s16 = smov 8  }
  0x13   :  { %39 = dma.hbm_to_vmem [thread:$0]  %s925_s1, 4096, %s34_s28, [#allocation6], %s786_s15, %s786_s15, %s787_s16  }
  0x14   :  { %s788_s19 = smov [#allocation2]   ;;  %s789_s21 = smov [#allocation7]  }
  0x15   :  { %s24_s20 = sshll.u32 %s788_s19, 4  ;;  %s47_s22 = sshll.u32 %s789_s21, 4  ;;  %s25_s20 = int_to_ptr.vmem [resolvable:$true] %s24_s20  ;;  %s48_s22 = int_to_ptr.vmem [resolvable:$true] %s47_s22 }
  0x16   :  { %s667_s25 = scalar_lea.hbm %s924_s0, 256 }
  0x17   :  { %p668_p8 = scmp.ne.s32.totalorder %s924_s0, %s667_s25  ;;  %p671_p9 = scmp.lt.u32.totalorder %s667_s25, %s924_s0 }
  0x19   :  { %p673_p10 = pnand %p671_p9, %p668_p8 }
  0x1b   :  { %676 = shalt.err (!%p673_p10)
}
  0x1c   :  { %s677_s1 = scalar_lea.vmem %s25_s20, 256  ;;  %p682_p12 = scmp.lt.s32.totalorder %s25_s20, %s25_s20 }
  0x1d   :  { %p678_p11 = scmp.ne.s32.totalorder %s25_s20, %s677_s1  ;;  %p683_p13 = scmp.lt.s32.totalorder %s677_s1, %s677_s1 }
  0x1f   :  { %p684_p0 = por %p683_p13, %p682_p12 }
  0x21   :  { %p685_p1 = pnand %p684_p0, %p678_p11 }
  0x23   :  { %688 = shalt.err (!%p685_p1)
}
  0x24   :  { %27 = dma.hbm_to_vmem [thread:$0]  %s924_s0, 256, %s25_s20, [#allocation3]  }
  0x25   :  { %s689_s12 = scalar_lea.hbm %s927_s3, 4096 }
  0x26   :  { %p690_p2 = scmp.ne.s32.totalorder %s927_s3, %s689_s12  ;;  %p693_p3 = scmp.lt.u32.totalorder %s689_s12, %s927_s3 }
  0x28   :  { %p695_p4 = pnand %p693_p3, %p690_p2 }
  0x2a   :  { %698 = shalt.err (!%p695_p4)
}
  0x2b   :  { %s699_s17 = scalar_lea.vmem %s48_s22, 4096  ;;  %p704_p6 = scmp.lt.s32.totalorder %s48_s22, %s48_s22 }
  0x2c   :  { %p700_p5 = scmp.ne.s32.totalorder %s48_s22, %s699_s17  ;;  %p705_p7 = scmp.lt.s32.totalorder %s699_s17, %s699_s17 }
  0x2e   :  { %p706_p8 = por %p705_p7, %p704_p6 }
  0x30   :  { %p707_p9 = pnand %p706_p8, %p700_p5 }
  0x32   :  { %710 = shalt.err (!%p707_p9)
}
  0x33   :  { %s790_s0 = smov 256   ;;  %s791_s18 = smov 16  }
  0x34   :  { %53 = dma.hbm_to_vmem [thread:$0]  %s927_s3, 4096, %s48_s22, [#allocation6], %s790_s0, %s790_s0, %s791_s18  }
  0x35   :  { %777 = dma.done.wait [#allocation3], 256  }
  0x36   :  { %778 = vsyncadd [#allocation3], 4294967040 }
  0x37   :  { %779 = dma.done.wait [#allocation6], 8192  }
  0x38   :  { %780 = vsyncadd [#allocation6], 4294959104  ;;  %v85_v0 = vld [vmem:[#allocation5 + $0x80] sm:$0xff]  ;;  %v86_v1 = vld [vmem:[#allocation5 + $0x88] sm:$0xff]  ;;  %vm793_vm0 = vmmov 0   ;;  %vm300_vm1 = vcmask 1041408  }
  0x39   :  { %v69_v2 = vld [vmem:[#allocation5] sm:$0xff]  ;;  %v560_v3 = vpack.c.bf16 %v86_v1, %v85_v0  ;;  %v70_v4 = vld [vmem:[#allocation5 + $0x8] sm:$0xff]  ;;  %v87_v5 = vld [vmem:[#allocation5 + $0x90] sm:$0xff]  ;;  %vm303_vm2 = vcmask 1043456   ;;  %vm420_vm3 = vcmask 9216   ;;  %s796_s26 = smov [#allocation8]  }
  0x3a   :  { %v88_v6 = vld [vmem:[#allocation5 + $0x98] sm:$0xff]  ;;  %v562_v7 = vpack.c.bf16 %v70_v4, %v69_v2  ;;  %v71_v9 = vld [vmem:[#allocation5 + $0x10] sm:$0xff]  ;;  %v89_v11 = vld [vmem:[#allocation5 + $0xa0] sm:$0xff]  ;;  %s480_s27 = sshll.u32 %s796_s26, 4  ;;  %s481_s27 = int_to_ptr.vmem [resolvable:$true] %s480_s27 }
  0x3b   :  { %v564_v8 = vpack.c.bf16 %v88_v6, %v87_v5  ;;  %v72_v10 = vld [vmem:[#allocation5 + $0x18] sm:$0xff]  ;;  %561 = vmatprep.subr.bf16.mxu0 %v560_v3  ;;  %v90_v12 = vld [vmem:[#allocation5 + $0xa8] sm:$0xff]  ;;  %v73_v15 = vld [vmem:[#allocation5 + $0x20] sm:$0xff] }
  0x3c   :  { %563 = vmatpush3.bf16.msra.mxu0 %v562_v7  ;;  %v566_v13 = vpack.c.bf16 %v72_v10, %v71_v9  ;;  %v568_v14 = vpack.c.bf16 %v90_v12, %v89_v11  ;;  %v74_v16 = vld [vmem:[#allocation5 + $0x28] sm:$0xff]  ;;  %v91_v17 = vld [vmem:[#allocation5 + $0xb0] sm:$0xff]  ;;  %v92_v18 = vld [vmem:[#allocation5 + $0xb8] sm:$0xff] }
  0x3d   :  { %565 = vmatprep.subr.bf16.mxu0 %v564_v8  ;;  %v570_v19 = vpack.c.bf16 %v74_v16, %v73_v15  ;;  %v572_v20 = vpack.c.bf16 %v92_v18, %v91_v17  ;;  %v75_v21 = vld [vmem:[#allocation5 + $0x30] sm:$0xff]  ;;  %v76_v22 = vld [vmem:[#allocation5 + $0x38] sm:$0xff]  ;;  %v93_v23 = vld [vmem:[#allocation5 + $0xc0] sm:$0xff] }
  0x3e   :  { %v94_v24 = vld [vmem:[#allocation5 + $0xc8] sm:$0xff]  ;;  %v68_v25 = vld [vmem:[#allocation2 + $0x8] sm:$0xff]  ;;  %v77_v26 = vld [vmem:[#allocation5 + $0x40] sm:$0xff]  ;;  %v574_v30 = vpack.c.bf16 %v76_v22, %v75_v21 }
  0x3f   :  { %v78_v27 = vld [vmem:[#allocation5 + $0x48] sm:$0xff]  ;;  %172 = vmatprep.mubr.f32.mxu0 %v68_v25  ;;  %v182_v29 = vld [vmem:[#allocation7 + $0x18] sm:$0xff]  ;;  %v95_v31 = vld [vmem:[#allocation5 + $0xd0] sm:$0xff]  ;;  %v576_v36 = vpack.c.bf16 %v94_v24, %v93_v23 }
  0x40   :  { %567 = vmatpush3.bf16.msra.mxu0 %v566_v13  ;;  %v180_v28 = vld [vmem:[#allocation7 + $0x8] sm:$0xff]  ;;  %v179_v33 = vld [vmem:[#allocation7] sm:$0xff]  ;;  %v181_v34 = vld [vmem:[#allocation7 + $0x10] sm:$0xff]  ;;  %v578_v46 = vpack.c.bf16 %v78_v27, %v77_v26 }
  0x41   :  { %569 = vmatprep.subr.bf16.mxu0 %v568_v14  ;;  %v592_v32 = vpack.c.bf16 %v182_v29, %v180_v28  ;;  %v184_v35 = vld [vmem:[#allocation7 + $0x28] sm:$0xff]  ;;  %v594_v37 = vpack.c.bf16 %v181_v34, %v179_v33  ;;  %v186_v38 = vld [vmem:[#allocation7 + $0x38] sm:$0xff]  ;;  %v183_v39 = vld [vmem:[#allocation7 + $0x20] sm:$0xff]  ;;  %v792_v34 = vmov 0.0  }
  0x42   :  { %v185_v40 = vld [vmem:[#allocation7 + $0x30] sm:$0xff]  ;;  %v96_v41 = vld [vmem:[#allocation5 + $0xd8] sm:$0xff]  ;;  %v596_v42 = vpack.c.bf16 %v186_v38, %v184_v35  ;;  %v188_v43 = vld [vmem:[#allocation7 + $0x48] sm:$0xff]  ;;  %287 = vmatprep.mubr.f32.mxu1 %v792_v34 }
  0x43   :  { %593 = vmatprep.subr.bf16.mxu1 %v592_v32  ;;  %v190_v44 = vld [vmem:[#allocation7 + $0x58] sm:$0xff]  ;;  %v598_v45 = vpack.c.bf16 %v185_v40, %v183_v39  ;;  %v79_v47 = vld [vmem:[#allocation5 + $0x50] sm:$0xff]  ;;  %v187_v49 = vld [vmem:[#allocation7 + $0x40] sm:$0xff]  ;;  %v580_v51 = vpack.c.bf16 %v96_v41, %v95_v31 }
  0x44   :  { %571 = vmatpush3.bf16.msra.mxu0 %v570_v19  ;;  %595 = vmatpush1.bf16.msra.mxu1 %v594_v37  ;;  %v600_v48 = vpack.c.bf16 %v190_v44, %v188_v43  ;;  %v189_v50 = vld [vmem:[#allocation7 + $0x50] sm:$0xff]  ;;  %v80_v52 = vld [vmem:[#allocation5 + $0x58] sm:$0xff]  ;;  %v192_v53 = vld [vmem:[#allocation7 + $0x68] sm:$0xff] }
  0x45   :  { %573 = vmatprep.subr.bf16.mxu0 %v572_v20  ;;  %597 = vmatprep.subr.bf16.mxu1 %v596_v42  ;;  %v194_v54 = vld [vmem:[#allocation7 + $0x78] sm:$0xff]  ;;  %v97_v55 = vld [vmem:[#allocation5 + $0xe0] sm:$0xff]  ;;  %v98_v56 = vld [vmem:[#allocation5 + $0xe8] sm:$0xff]  ;;  %v602_v57 = vpack.c.bf16 %v189_v50, %v187_v49  ;;  %v582_v58 = vpack.c.bf16 %v80_v52, %v79_v47 }
  0x46   :  { %v81_v59 = vld [vmem:[#allocation5 + $0x60] sm:$0xff]  ;;  %v604_v60 = vpack.c.bf16 %v194_v54, %v192_v53  ;;  %v193_v62 = vld [vmem:[#allocation7 + $0x70] sm:$0xff]  ;;  %v584_v63 = vpack.c.bf16 %v98_v56, %v97_v55  ;;  %v82_v0 = vld [vmem:[#allocation5 + $0x68] sm:$0xff] }
  0x47   :  { %v191_v61 = vld [vmem:[#allocation7 + $0x60] sm:$0xff]  ;;  %v196_v1 = vld [vmem:[#allocation7 + $0x88] sm:$0xff]  ;;  %v198_v2 = vld [vmem:[#allocation7 + $0x98] sm:$0xff]  ;;  %v586_v6 = vpack.c.bf16 %v82_v0, %v81_v59 }
  0x48   :  { %575 = vmatpush3.bf16.msra.mxu0 %v574_v30  ;;  %599 = vmatpush1.bf16.msra.mxu1 %v598_v45  ;;  %v99_v3 = vld [vmem:[#allocation5 + $0xf0] sm:$0xff]  ;;  %v100_v4 = vld [vmem:[#allocation5 + $0xf8] sm:$0xff]  ;;  %v606_v5 = vpack.c.bf16 %v193_v62, %v191_v61  ;;  %v608_v8 = vpack.c.bf16 %v198_v2, %v196_v1  ;;  %v195_v9 = vld [vmem:[#allocation7 + $0x80] sm:$0xff] }
  0x49   :  { %577 = vmatprep.subr.bf16.mxu0 %v576_v36  ;;  %601 = vmatprep.subr.bf16.mxu1 %v600_v48  ;;  %v83_v7 = vld [vmem:[#allocation5 + $0x70] sm:$0xff]  ;;  %v588_v11 = vpack.c.bf16 %v100_v4, %v99_v3  ;;  %v84_v12 = vld [vmem:[#allocation5 + $0x78] sm:$0xff]  ;;  %v200_v13 = vld [vmem:[#allocation7 + $0xa8] sm:$0xff] }
  0x4a   :  { %v197_v10 = vld [vmem:[#allocation7 + $0x90] sm:$0xff]  ;;  %v202_v14 = vld [vmem:[#allocation7 + $0xb8] sm:$0xff]  ;;  %v590_v16 = vpack.c.bf16 %v84_v12, %v83_v7  ;;  %v199_v18 = vld [vmem:[#allocation7 + $0xa0] sm:$0xff] }
  0x4b   :  { %v610_v15 = vpack.c.bf16 %v197_v10, %v195_v9  ;;  %v612_v17 = vpack.c.bf16 %v202_v14, %v200_v13  ;;  %v201_v19 = vld [vmem:[#allocation7 + $0xb0] sm:$0xff]  ;;  %v204_v20 = vld [vmem:[#allocation7 + $0xc8] sm:$0xff]  ;;  %v206_v21 = vld [vmem:[#allocation7 + $0xd8] sm:$0xff] }
  0x4c   :  { %579 = vmatpush3.bf16.msra.mxu0 %v578_v46  ;;  %603 = vmatpush1.bf16.msra.mxu1 %v602_v57  ;;  %v614_v22 = vpack.c.bf16 %v201_v19, %v199_v18  ;;  %v67_v23 = vld [vmem:[#allocation2] sm:$0xff]  ;;  %v616_v24 = vpack.c.bf16 %v206_v21, %v204_v20  ;;  %v203_v25 = vld [vmem:[#allocation7 + $0xc0] sm:$0xff]  ;;  %v208_v28 = vld [vmem:[#allocation7 + $0xe8] sm:$0xff]  ;;  %v213_v46 = vlaneseq }
  0x4d   :  { %581 = vmatprep.subr.bf16.mxu0 %v580_v51  ;;  %605 = vmatprep.subr.bf16.mxu1 %v604_v60  ;;  %v205_v26 = vld [vmem:[#allocation7 + $0xd0] sm:$0xff]  ;;  %v210_v29 = vld [vmem:[#allocation7 + $0xf8] sm:$0xff]  ;;  %v207_v31 = vld [vmem:[#allocation7 + $0xe0] sm:$0xff] }
  0x4e   :  { %v618_v27 = vpack.c.bf16 %v205_v26, %v203_v25  ;;  %v620_v30 = vpack.c.bf16 %v210_v29, %v208_v28  ;;  %v209_v32 = vld [vmem:[#allocation7 + $0xf0] sm:$0xff]  ;;  %v214_v47 = vshrl.u32 %v213_v46, 7 }
  0x4f   :  { %v622_v33 = vpack.c.bf16 %v209_v32, %v207_v31  ;;  %v517_v36 = vld [vmem:[%s926_s2] ss:$0 sm:$0xff] }
  0x50   :  { %583 = vmatpush3.bf16.msra.mxu0 %v582_v58  ;;  %607 = vmatpush1.bf16.msra.mxu1 %v606_v5  ;;  %v296_v40 = vld [vmem:[%s929_s5] sm:$0x3]  ;;  %v215_v48 = vsub.s32 0, %v214_v47  ;;  %v219_v50 = vsub.s32 1, %v214_v47  ;;  %s795_s5 = smov [#allocation9]  }
  0x51   :  { %585 = vmatprep.subr.bf16.mxu0 %v584_v63  ;;  %609 = vmatprep.subr.bf16.mxu1 %v608_v8  ;;  %v211_v49 = vld [vmem:[%s928_s4] sm:$0x3]  ;;  %s794_s4 = smov 126   ;;  %s490_s25 = sshll.u32 %s795_s5, 4  ;;  %s491_s25 = int_to_ptr.vmem [resolvable:$true] %s490_s25 }
  0x52   :  { %v216_v51 = vrot.slane %v211_v49, %v215_v48  ;;  %v220_v52 = vrot.slane %v211_v49, %v219_v50  ;;  %s711_s29 = scalar_lea.vmem %s491_s25, 256  ;;  %p716_p11 = scmp.lt.s32.totalorder %s491_s25, %s491_s25 }
  0x53   :  { %p712_p10 = scmp.ne.s32.totalorder %s491_s25, %s711_s29  ;;  %p717_p12 = scmp.lt.s32.totalorder %s711_s29, %s711_s29 }
  0x54   :  { %587 = vmatpush3.bf16.msra.mxu0 %v586_v6  ;;  %611 = vmatpush1.bf16.msra.mxu1 %v610_v15 }
  0x55   :  { %589 = vmatprep.subr.bf16.mxu0 %v588_v11  ;;  %613 = vmatprep.subr.bf16.mxu1 %v612_v17  ;;  %p718_p13 = por %p717_p12, %p716_p11 }
  0x57   :  { %p719_p0 = pnand %p718_p13, %p712_p10 }
  0x58   :  { %591 = vmatpush3.bf16.msra.mxu0 %v590_v16  ;;  %615 = vmatpush1.bf16.msra.mxu1 %v614_v22 }
  0x59   :  { %617 = vmatprep.subr.bf16.mxu1 %v616_v24  ;;  %555 = vmatprep.subr.mxu0 %v792_v34 }
  0x5b   :  { %173 = vmatmul.mubr.f32.vlgmr.msra.gmra.mrb[0].mxu0 %v67_v23 }
  0x5c   :  { %619 = vmatpush1.bf16.msra.mxu1 %v618_v27  ;;  %557 = vmatprep.mubr.msk.f32.mxu0 %vm793_vm0, %v792_v34 }
  0x5d   :  { %621 = vmatprep.subr.bf16.mxu1 %v620_v30 }
  0x60   :  { %623 = vmatpush1.bf16.msra.mxu1 %v622_v33 }
 0x12e   :  { %v550_v35 = vpop.f32.mrb[0].mxu0 }
 0x12f   :  { %v551_v37 = vpop.f32.mrb[1].mxu0 }
 0x130   :  { %v552_v38 = vadd.f32 %v551_v37, %v550_v35 }
 0x132   :  { %v175_v39 = vadd.f32 %v552_v38, %v517_v36 }
 0x134   :  { %v298_v41 = vrot.slane %v175_v39, 6  ;;  %178 = vst [vmem:[#allocation8] sm:$0xff] %v175_v39  ;;  %288 = vmatmul.mubr.f32.vlgmr.msra.gmra.mrb[0].mxu1 %v175_v39 }
 0x136   :  { %v301_v42 = vsel %vm300_vm1, %v296_v40, %v298_v41 }
 0x137   :  { %556 = vmatpush3.xpose.msra.mxu0 %v301_v42  ;;  %v302_v43 = vmul.f32 %v301_v42, %v301_v42 }
 0x139   :  { %v304_v44 = vsel %vm303_vm2, %v302_v43, 0.0 }
 0x13a   :  { %558 = vmatmul.mubr.f32.vlgmr.msra.gmra.mrb[2].mxu0 %v301_v42  ;;  %305 = vadd.xlane.f32.xlu0 %v304_v44 }
 0x1c7   :  { %v306_v45 = vpop.xlane.xlu0 %305 }
 0x1c8   :  { %377 = vxpose.xlu0.b32.start.end [1/1] (short) (narrow) %v306_v45, 8 }
 0x207   :  { %v289_v53 = vpop.f32.mrb[0].mxu1 }
 0x208   :  { %v290_v54 = vadd.f32 %v289_v53, %v216_v51  ;;  %v291_v55 = vpop.f32.mrb[1].mxu1 }
 0x209   :  { %v292_v56 = vadd.f32 %v291_v55, %v220_v52 }
 0x20a   :  { %294 = vst [vmem:[#allocation9] sm:$0xff] %v290_v54 }
 0x20b   :  { %295 = vst [vmem:[#allocation9 + $0x8] sm:$0xff] %v292_v56 }
 0x20d   :  { %v373_v57 = vpop.f32.mrb[2].mxu0 }
 0x20e   :  { %v559_v58 = vpop.f32.mrb[3].mxu0  ;;  %v414_v61 = vmul.f32 2.0, %v373_v57 }
 0x248   :  { %v393_v59 = vpop.trf.xlu0 }
 0x249   :  { %v412_v60 = vrot.slane %v393_v59, %v215_v48 }
 0x24b   :  { %v413_v62 = vadd.f32 %v412_v60, %v306_v45 }
 0x24d   :  { %v415_v63 = vsub.f32 %v413_v62, %v414_v61 }
 0x24f   :  { %v416_v0 = vmax.f32 %v415_v63, 0.0 }
 0x251   :  { %v417_v1 = vmul.f32 -0.00390625, %v416_v0 }
 0x253   :  { %v418_v2 = vmul.f32 1.442695, %v417_v1 }
 0x255   :  { %643 = vpow2.f32 %v418_v2 }
 0x25f   :  { %v644_v3 = vpop.eup %643 }
 0x260   :  { %v435_v4 = vrot.slane %v644_v3, 2  ;;  %v421_v5 = vsel %vm420_vm3, %v644_v3, 0.0 }
 0x262   :  { %436 = vrot.lane.b32.xlu1 %v435_v4, %s794_s4 }
 0x266   :  { %453 = vrot.lane.b32.xlu1 %v644_v3, %s794_s4 }
 0x28a   :  { %422 = vadd.xlane.f32.xlu1 %v421_v5 }
 0x2d4   :  { %v437_v6 = vpop.permute.xlu1 %436 }
 0x2d5   :  { %v439_v7 = vsel %vm420_vm3, %v437_v6, 0.0 }
 0x2d6   :  { %440 = vadd.xlane.f32.xlu1 %v439_v7 }
 0x2d8   :  { %v454_v8 = vpop.permute.xlu1 %453 }
 0x2d9   :  { %v456_v9 = vsel %vm420_vm3, %v454_v8, 0.0 }
 0x2da   :  { %457 = vadd.xlane.f32.xlu1 %v456_v9 }
 0x317   :  { %v423_v10 = vpop.xlane.xlu1 %422 }
 0x318   :  { %v424_v11 = vrot.slane %v423_v10, 4 }
 0x31a   :  { %v425_v12 = vadd.f32 %v424_v11, %v423_v10 }
 0x31c   :  { %v426_v13 = vrot.slane %v425_v12, 2 }
 0x31e   :  { %v427_v14 = vadd.f32 %v426_v13, %v425_v12 }
 0x320   :  { %v428_v15 = vrot.slane %v427_v14, 1 }
 0x322   :  { %v429_v16 = vadd.f32 %v428_v15, %v427_v14 }
 0x324   :  { %624 = vpush %v429_v16 }
 0x325   :  { %722 = shalt.err (!%p719_p0)
}
 0x326   :  { %s723_s28 = scalar_lea.hbm %s931_s7, 256 }
 0x327   :  { %p724_p1 = scmp.ne.s32.totalorder %s931_s7, %s723_s28  ;;  %p727_p2 = scmp.lt.u32.totalorder %s723_s28, %s931_s7 }
 0x329   :  { %p729_p3 = pnand %p727_p2, %p724_p1 }
 0x32b   :  { %732 = shalt.err (!%p729_p3)
}
 0x32c   :  { %493 = dma.vmem_to_hbm [thread:$0]  %s491_s25, 256, %s931_s7, [#allocation10]  }
 0x32d   :  { %s733_s15 = scalar_lea.vmem %s481_s27, 128  ;;  %p738_p5 = scmp.lt.s32.totalorder %s481_s27, %s481_s27 }
 0x32e   :  { %p734_p4 = scmp.ne.s32.totalorder %s481_s27, %s733_s15  ;;  %p739_p6 = scmp.lt.s32.totalorder %s733_s15, %s733_s15 }
 0x330   :  { %p740_p7 = por %p739_p6, %p738_p5 }
 0x332   :  { %p741_p8 = pnand %p740_p7, %p734_p4 }
 0x334   :  { %744 = shalt.err (!%p741_p8)
}
 0x335   :  { %s745_s0 = scalar_lea.hbm %s930_s6, 128 }
 0x336   :  { %p746_p9 = scmp.ne.s32.totalorder %s930_s6, %s745_s0  ;;  %p749_p10 = scmp.lt.u32.totalorder %s745_s0, %s930_s6 }
 0x338   :  { %p751_p11 = pnand %p749_p10, %p746_p9 }
 0x33a   :  { %754 = shalt.err (!%p751_p11)
}
 0x33b   :  { %483 = dma.vmem_to_hbm [thread:$0]  %s481_s27, 128, %s930_s6, [#allocation4]   ;;  %vm472_vm4 = vcmask 0  }
 0x33c   :  { %s797_s5 = smov [#allocation11]  }
 0x33d   :  { %s500_s25 = sshll.u32 %s797_s5, 4  ;;  %s501_s25 = int_to_ptr.vmem [resolvable:$true] %s500_s25 }
 0x33e   :  { %s755_s30 = scalar_lea.vmem %s501_s25, 16  ;;  %s759_s1 = scalar_lea.vmem %s501_s25, 32 }
 0x33f   :  { %p756_p12 = scmp.ne.s32.totalorder %s501_s25, %s755_s30  ;;  %p760_p13 = scmp.lt.s32.totalorder %s501_s25, %s501_s25 }
 0x340   :  { %p761_p0 = scmp.lt.s32.totalorder %s759_s1, %s755_s30 }
 0x342   :  { %p762_p1 = por %p761_p0, %p760_p13 }
 0x344   :  { %p763_p2 = pnand %p762_p1, %p756_p12 }
 0x355   :  { %s625_s22 = spop %624 }
 0x356   :  { %s433_s6 = smul.f32 0.25, %s625_s22 }
 0x363   :  { %v441_v17 = vpop.xlane.xlu1 %440 }
 0x364   :  { %v442_v18 = vrot.slane %v441_v17, 4 }
 0x366   :  { %v443_v19 = vadd.f32 %v442_v18, %v441_v17 }
 0x367   :  { %v458_v20 = vpop.xlane.xlu1 %457 }
 0x368   :  { %v444_v21 = vrot.slane %v443_v19, 2  ;;  %v459_v22 = vrot.slane %v458_v20, 4 }
 0x36a   :  { %v460_v23 = vadd.f32 %v459_v22, %v458_v20  ;;  %v445_v24 = vadd.f32 %v444_v21, %v443_v19 }
 0x36c   :  { %v461_v25 = vrot.slane %v460_v23, 2  ;;  %v446_v26 = vrot.slane %v445_v24, 1 }
 0x36e   :  { %v462_v27 = vadd.f32 %v461_v25, %v460_v23  ;;  %v447_v28 = vadd.f32 %v446_v26, %v445_v24 }
 0x370   :  { %626 = vpush %v447_v28  ;;  %v463_v29 = vrot.slane %v462_v27, 1 }
 0x372   :  { %v464_v30 = vadd.f32 %v463_v29, %v462_v27 }
 0x374   :  { %628 = vpush %v464_v30 }
 0x3a1   :  { %s627_s23 = spop %626 }
 0x3a2   :  { %s451_s2 = smul.f32 0.25, %s627_s23 }
 0x3a4   :  { %s452_s26 = sadd.f32 %s451_s2, %s433_s6 }
 0x3a5   :  { %s629_s24 = spop %628 }
 0x3a6   :  { %s468_s4 = smul.f32 0.25, %s629_s24 }
 0x3a8   :  { %s469_s27 = smul.f32 2.0, %s468_s4 }
 0x3aa   :  { %s470_s29 = ssub.f32 %s452_s26, %s469_s27 }
 0x3ac   :  { %v471_v31 = vstv %s470_s29 }
 0x3ad   :  { %473 = vst.msk [vmem:[#allocation11] sm:$0x1] %vm472_vm4, %v471_v31 }
 0x3ae   :  { %766 = shalt.err (!%p763_p2)
}
 0x3af   :  { %s767_s10 = scalar_lea.hbm %s932_s8, 16 }
 0x3b0   :  { %p768_p3 = scmp.ne.s32.totalorder %s932_s8, %s767_s10  ;;  %p771_p4 = scmp.lt.u32.totalorder %s767_s10, %s932_s8 }
 0x3b2   :  { %p773_p5 = pnand %p771_p4, %p768_p3 }
 0x3b4   :  { %776 = shalt.err (!%p773_p5)
}
 0x3b5   :  { %503 = dma.vmem_to_hbm [thread:$0]  %s501_s25, 16, %s932_s8, [#allocation10]  }
 0x3b6   :  { %781 = dma.done.wait [#allocation4], 128  }
 0x3b7   :  { %782 = vsyncadd [#allocation4], 4294967168 }
 0x3b8   :  { %783 = dma.done.wait [#allocation10], 272  }
 0x3b9   :  { %784 = vsyncadd [#allocation10], 4294967024 }
 0x3ba   :  { %513 = vsyncpa [#allocation3], 1 }
 0x3bb   :  { %514 = vsyncpa [#allocation6], 1 }
 0x3bc   :  { %515 = vsyncpa [#allocation4], 1 }
 0x3bd   :  { %516 = vsyncpa [#allocation10], 1 }

</bundles_post_ra>
